<compile_context>
chip_gen: v7x
topology: tpu7x:2x2x1
jax: 0.10.0
libtpu: 0.0.40
codegen_flags: <defaults>
</compile_context>

<pallas_src>
import functools

import jax
import jax.numpy as jnp
from jax import lax
from jax.experimental import pallas as pl
from jax.experimental.pallas import tpu as pltpu


def _pick_chunk(hw, max_chunk):
    """Largest lane-friendly HW chunk: HW itself if small, else a /128 divisor."""
    if hw <= max_chunk:
        return hw
    for cand in range(max_chunk, 0, -128):
        if hw % cand == 0:
            return cand
    return max_chunk  # no multiple-of-128 divisor: ragged last chunk, masked in-kernel


def _off_smooth_l1_kernel(ind_ref, feat_ref, mask_ref, target_ref, out_ref,
                          pred_ref, *, HW, T, K, C, ragged, exact_f32):
    t = pl.program_id(1)

    @pl.when(t == 0)
    def _():
        pred_ref[...] = jnp.zeros_like(pred_ref)

    idx = ind_ref[0]                                    # (1, K) int32
    feat = feat_ref[0]                                  # (C, T), native dtype

    # One-hot built from a (T, 1) column iota broadcast against (1, K) indices,
    # cast once into the matmul dtype.  No (T, K) int32 intermediate.
    pos = lax.broadcasted_iota(jnp.int32, (T, 1), 0) + t * T     # (T, 1)
    onehot = (pos == idx).astype(feat.dtype)                      # (T, K)

    if ragged:
        # Last chunk may be partial: zero padded lanes of feat so that
        # garbage * 0 can never leak NaN/Inf into the accumulation.
        valid = (lax.broadcasted_iota(jnp.int32, (1, T), 1) + t * T) < HW
        feat = jnp.where(valid, feat, jnp.zeros_like(feat))

    # Vectorized gather of K spatial positions via one MXU matmul per chunk:
    #   pred[c, k] += feat[c, pos] @ onehot[pos, k]
    prec = jax.lax.Precision.HIGHEST if exact_f32 else None
    pred_ref[...] += jnp.dot(feat, onehot, precision=prec,
                             preferred_element_type=jnp.float32)  # (C, K) f32

    @pl.when(t == pl.num_programs(1) - 1)
    def _():
        tgt = target_ref[0].astype(jnp.float32)          # (C, K)
        m = mask_ref[0]                                  # (1, K) f32 (0/1)

        # F.smooth_l1_loss elementwise term (beta = 1.0, PyTorch default).
        diff = jnp.abs(pred_ref[...] - tgt)
        elem = jnp.where(diff < 1.0, 0.5 * diff * diff, diff - 0.5)
        elem = jnp.where(m > 0.0, elem, 0.0)             # select, no 0*inf leak

        loss_sum = jnp.sum(elem)                                     # masked sum
        count = jnp.sum((m > 0.0).astype(jnp.float32)) * jnp.float32(C)

        # Lane-dense partial writeback: lane 0 = loss sum, lane 1 = count.
        lane = lax.broadcasted_iota(jnp.int32, (1, 128), 1)
        out_ref[0] = jnp.where(lane == 0, loss_sum,
                               jnp.where(lane == 1, count, 0.0))


def off_smooth_l1_loss(output, mask, ind, target, *, max_chunk=2048):
    """output: (B, C, H, W); mask: (B, K); ind: (B, K) int; target: (B, K, C)."""
    B, C, H, W = output.shape
    K = ind.shape[1]
    HW = H * W

    T = _pick_chunk(HW, max_chunk)
    num_chunks = pl.cdiv(HW, T)
    ragged = (HW % T) != 0

    # Free reshape (no data movement), native dtype; HW lands on the lane axis.
    feat = output.reshape(B, C, HW)
    # Tiny side inputs, reshaped so K is the lane axis.
    target_t = jnp.transpose(target, (0, 2, 1))              # (B, C, K)
    mask_f = mask.astype(jnp.float32).reshape(B, 1, K)        # (B, 1, K)
    ind_i = ind.astype(jnp.int32).reshape(B, 1, K)            # (B, 1, K)

    exact_f32 = (output.dtype == jnp.float32)   # bit-exact f32 gather only if needed

    kernel = functools.partial(
        _off_smooth_l1_kernel, HW=HW, T=T, K=K, C=C,
        ragged=ragged, exact_f32=exact_f32)

    itemsize = jnp.dtype(output.dtype).itemsize
    cost = pl.CostEstimate(
        flops=2 * B * C * HW * K + 8 * B * C * K,
        transcendentals=0,
        bytes_accessed=B * C * HW * itemsize + B * K * (C + 2) * 4 + B * 128 * 4,
    )

    partials = pl.pallas_call(
        kernel,
        out_shape=jax.ShapeDtypeStruct((B, 1, 128), jnp.float32),
        grid_spec=pltpu.PrefetchScalarGridSpec(
            num_scalar_prefetch=0,
            grid=(B, num_chunks),
            in_specs=[
                pl.BlockSpec((1, 1, K), lambda b, t: (b, 0, 0)),   # ind    (lane=K)
                pl.BlockSpec((1, C, T), lambda b, t: (b, 0, t)),   # feat   (lane=T chunk)
                pl.BlockSpec((1, 1, K), lambda b, t: (b, 0, 0)),   # mask   (lane=K)
                pl.BlockSpec((1, C, K), lambda b, t: (b, 0, 0)),   # target (lane=K)
            ],
            out_specs=pl.BlockSpec((1, 1, 128), lambda b, t: (b, 0, 0)),
            scratch_shapes=[pltpu.VMEM((C, K), jnp.float32)],      # pred accumulator
        ),
        compiler_params=pltpu.CompilerParams(
            dimension_semantics=("parallel", "arbitrary")),        # batch || , HW reduce
        cost_estimate=cost,
    )(ind_i, feat, mask_f, target_t)

    total = jnp.sum(partials[:, 0, 0])
    count = jnp.sum(partials[:, 0, 1])
    # if mask.sum() == 0 -> 0.0 (matches the PyTorch else-branch)
    return jnp.where(count > 0, total / jnp.maximum(count, 1.0), jnp.float32(0.0))


def _reference_loss(output, mask, ind, target):
    """Pure-JAX reference mirroring the PyTorch forward."""
    B, C, H, W = output.shape
    K = ind.shape[1]
    feat = jnp.transpose(output, (0, 2, 3, 1)).reshape(B, H * W, C)
    idx = jnp.broadcast_to(ind[..., None].astype(jnp.int32), (B, K, C))
    pred = jnp.take_along_axis(feat, idx, axis=1)
    diff = jnp.abs(pred - target)
    elem = jnp.where(diff < 1.0, 0.5 * diff * diff, diff - 0.5)
    m = (mask > 0).astype(jnp.float32)[..., None]
    total = jnp.sum(elem * m)
    cnt = jnp.sum(m) * C
    return jnp.where(cnt > 0, total / jnp.maximum(cnt, 1.0), 0.0)


if __name__ == "__main__":
    key = jax.random.PRNGKey(0)
    k1, k2, k3, k4 = jax.random.split(key, 4)

    B, C, H, W, K = 2, 4, 16, 16, 8

    output = jax.random.normal(k1, (B, C, H, W), dtype=jnp.float32)
    target = jax.random.normal(k2, (B, K, C), dtype=jnp.float32)
    ind = jax.random.randint(k3, (B, K), 0, H * W, dtype=jnp.int32)
    # mask: some valid, some padded (zeros)
    mask = (jax.random.uniform(k4, (B, K)) > 0.3).astype(jnp.float32)

    ref = _reference_loss(output, mask, ind, target)

    # Single-chunk path (HW = 256 <= default max_chunk).
    loss = jax.block_until_ready(off_smooth_l1_loss(output, mask, ind, target))
    assert jnp.allclose(loss, ref, rtol=1e-4, atol=1e-5), (loss, ref)

    # Multi-chunk accumulation path (HW split into 2 x 128-lane chunks).
    loss_c = jax.block_until_ready(
        off_smooth_l1_loss(output, mask, ind, target, max_chunk=128))
    assert jnp.allclose(loss_c, ref, rtol=1e-4, atol=1e-5), (loss_c, ref)

    # Empty-mask branch -> 0.0 (matches the PyTorch `if mask.sum()` else path).
    zero = jax.block_until_ready(
        off_smooth_l1_loss(output, jnp.zeros_like(mask), ind, target))
    assert float(zero) == 0.0, zero

    print("KERNEL_OK")
</pallas_src>

<mosaic_0001>
module attributes {stable_mosaic.version = 11 : i64} {
  func.func @_off_smooth_l1_kernel(%arg0: i32, %arg1: i32, %arg2: memref<1x1x8xi32, #tpu.memory_space<vmem>>, %arg3: memref<1x4x256xf32, #tpu.memory_space<vmem>>, %arg4: memref<1x1x8xf32, #tpu.memory_space<vmem>>, %arg5: memref<1x4x8xf32, #tpu.memory_space<vmem>>, %arg6: memref<1x1x128xf32, #tpu.memory_space<vmem>>, %arg7: memref<4x8xf32, #tpu.memory_space<vmem>>) attributes {dimension_semantics = [#tpu.dimension_semantics<parallel>, #tpu.dimension_semantics<arbitrary>], iteration_bounds = array<i64: 2, 1>, scalar_prefetch = 0 : i64, scratch_operands = 1 : i64, tpu.core_type = #tpu.core_type<tc>, window_params = [{transform_indices = @transform_0, window_bounds = array<i64: 1, 1, 8>}, {transform_indices = @transform_1, window_bounds = array<i64: 1, 4, 256>}, {transform_indices = @transform_2, window_bounds = array<i64: 1, 1, 8>}, {transform_indices = @transform_3, window_bounds = array<i64: 1, 4, 8>}, {transform_indices = @transform_4, window_bounds = array<i64: 1, 1, 128>}]} {
    %c0_i32 = arith.constant 0 : i32
    %0 = arith.cmpi eq, %arg1, %c0_i32 : i32
    %1 = arith.extui %0 : i1 to i32
    %c0_i32_0 = arith.constant 0 : i32
    %2 = arith.cmpi ne, %1, %c0_i32_0 : i32
    scf.if %2 {
      %cst_12 = arith.constant 0.000000e+00 : f32
      %23 = vector.broadcast %cst_12 : f32 to vector<4x8xf32>
      %c0_13 = arith.constant 0 : index
      %c0_14 = arith.constant 0 : index
      %24 = vector.load %arg7[%c0_13, %c0_14] : memref<4x8xf32, #tpu.memory_space<vmem>>, vector<4x8xf32>
      tpu.vector_store %arg7[%c0_13, %c0_14], %23 {strides = array<i32>} : memref<4x8xf32, #tpu.memory_space<vmem>>, vector<4x8xf32>,
    } else {
    }
    %c0 = arith.constant 0 : index
    %c0_1 = arith.constant 0 : index
    %c0_2 = arith.constant 0 : index
    %3 = vector.load %arg2[%c0, %c0_1, %c0_2] : memref<1x1x8xi32, #tpu.memory_space<vmem>>, vector<1x1x8xi32>
    %4 = vector.shape_cast %3 : vector<1x1x8xi32> to vector<1x8xi32>
    %c0_3 = arith.constant 0 : index
    %c0_4 = arith.constant 0 : index
    %c0_5 = arith.constant 0 : index
    %5 = vector.load %arg3[%c0_3, %c0_4, %c0_5] : memref<1x4x256xf32, #tpu.memory_space<vmem>>, vector<1x4x256xf32>
    %6 = vector.shape_cast %5 : vector<1x4x256xf32> to vector<4x256xf32>
    %7 = tpu.iota {dimensions = array<i32: 0>} : vector<256x1xi32>
    %c256_i32 = arith.constant 256 : i32
    %8 = arith.muli %arg1, %c256_i32 : i32
    %9 = vector.broadcast %8 : i32 to vector<256x1xi32>
    %10 = arith.addi %7, %9 : vector<256x1xi32>
    %11 = vector.broadcast %10 : vector<256x1xi32> to vector<256x8xi32>
    %12 = vector.broadcast %4 : vector<1x8xi32> to vector<256x8xi32>
    %13 = arith.cmpi eq, %11, %12 : vector<256x8xi32>
    %14 = arith.extui %13 : vector<256x8xi1> to vector<256x8xi32>
    %15 = arith.sitofp %14 : vector<256x8xi32> to vector<256x8xf32>
    %c0_6 = arith.constant 0 : index
    %c0_7 = arith.constant 0 : index
    %16 = vector.load %arg7[%c0_6, %c0_7] : memref<4x8xf32, #tpu.memory_space<vmem>>, vector<4x8xf32>
    %cst = arith.constant dense<0.000000e+00> : vector<4x8xf32>
    %17 = tpu.matmul %6, %15, %cst {dimension_numbers = #tpu.dot_dimension_numbers<[1], [0], [0], [1], [0, 0, 1, 1], [], []>, precision = #tpu.contract_precision<fp32>} : vector<4x256xf32>, vector<256x8xf32>, vector<4x8xf32> -> vector<4x8xf32>
    %18 = arith.addf %16, %17 : vector<4x8xf32>
    %c0_8 = arith.constant 0 : index
    %c0_9 = arith.constant 0 : index
    %19 = vector.load %arg7[%c0_8, %c0_9] : memref<4x8xf32, #tpu.memory_space<vmem>>, vector<4x8xf32>
    tpu.vector_store %arg7[%c0_8, %c0_9], %18 {strides = array<i32>} : memref<4x8xf32, #tpu.memory_space<vmem>>, vector<4x8xf32>,
    %c0_i32_10 = arith.constant 0 : i32
    %20 = arith.cmpi eq, %arg1, %c0_i32_10 : i32
    %21 = arith.extui %20 : i1 to i32
    %c0_i32_11 = arith.constant 0 : i32
    %22 = arith.cmpi ne, %21, %c0_i32_11 : i32
    scf.if %22 {
      %c0_12 = arith.constant 0 : index
      %c0_13 = arith.constant 0 : index
      %c0_14 = arith.constant 0 : index
      %23 = vector.load %arg5[%c0_12, %c0_13, %c0_14] : memref<1x4x8xf32, #tpu.memory_space<vmem>>, vector<1x4x8xf32>
      %24 = vector.shape_cast %23 : vector<1x4x8xf32> to vector<4x8xf32>
      %c0_15 = arith.constant 0 : index
      %c0_16 = arith.constant 0 : index
      %c0_17 = arith.constant 0 : index
      %25 = vector.load %arg4[%c0_15, %c0_16, %c0_17] : memref<1x1x8xf32, #tpu.memory_space<vmem>>, vector<1x1x8xf32>
      %26 = vector.shape_cast %25 : vector<1x1x8xf32> to vector<1x8xf32>
      %c0_18 = arith.constant 0 : index
      %c0_19 = arith.constant 0 : index
      %27 = vector.load %arg7[%c0_18, %c0_19] : memref<4x8xf32, #tpu.memory_space<vmem>>, vector<4x8xf32>
      %28 = arith.subf %27, %24 : vector<4x8xf32>
      %29 = math.absf %28 : vector<4x8xf32>
      %cst_20 = arith.constant 1.000000e+00 : f32
      %30 = vector.broadcast %cst_20 : f32 to vector<4x8xf32>
      %31 = arith.cmpf olt, %29, %30 : vector<4x8xf32>
      %cst_21 = arith.constant 5.000000e-01 : f32
      %32 = vector.broadcast %cst_21 : f32 to vector<4x8xf32>
      %33 = arith.mulf %32, %29 : vector<4x8xf32>
      %34 = arith.mulf %33, %29 : vector<4x8xf32>
      %cst_22 = arith.constant 5.000000e-01 : f32
      %35 = vector.broadcast %cst_22 : f32 to vector<4x8xf32>
      %36 = arith.subf %29, %35 : vector<4x8xf32>
      %37 = arith.select %31, %34, %36 : vector<4x8xi1>, vector<4x8xf32>
      %cst_23 = arith.constant 0.000000e+00 : f32
      %38 = vector.broadcast %cst_23 : f32 to vector<1x8xf32>
      %39 = arith.cmpf ogt, %26, %38 : vector<1x8xf32>
      %cst_24 = arith.constant 0.000000e+00 : f32
      %40 = vector.shape_cast %39 : vector<1x8xi1> to vector<1x8xi1>
      %41 = vector.broadcast %40 : vector<1x8xi1> to vector<4x8xi1>
      %42 = vector.broadcast %cst_24 : f32 to vector<4x8xf32>
      %43 = arith.select %41, %37, %42 : vector<4x8xi1>, vector<4x8xf32>
      %44 = vector.shape_cast %43 : vector<4x8xf32> to vector<1x4x8xf32>
      %cst_25 = arith.constant dense<0.000000e+00> : vector<1xf32>
      %45 = vector.multi_reduction <add>, %44, %cst_25 [1, 2] : vector<1x4x8xf32> to vector<1xf32>
      %46 = vector.shape_cast %45 : vector<1xf32> to vector<1x1x1xf32>
      %47 = vector.extract %46[0, 0, 0] : f32 from vector<1x1x1xf32>
      %cst_26 = arith.constant 0.000000e+00 : f32
      %48 = vector.broadcast %cst_26 : f32 to vector<1x8xf32>
      %49 = arith.cmpf ogt, %26, %48 : vector<1x8xf32>
      %50 = arith.extui %49 : vector<1x8xi1> to vector<1x8xi32>
      %51 = arith.sitofp %50 : vector<1x8xi32> to vector<1x8xf32>
      %52 = vector.shape_cast %51 : vector<1x8xf32> to vector<1x1x8xf32>
      %cst_27 = arith.constant dense<0.000000e+00> : vector<1xf32>
      %53 = vector.multi_reduction <add>, %52, %cst_27 [1, 2] : vector<1x1x8xf32> to vector<1xf32>
      %54 = vector.shape_cast %53 : vector<1xf32> to vector<1x1x1xf32>
      %55 = vector.extract %54[0, 0, 0] : f32 from vector<1x1x1xf32>
      %cst_28 = arith.constant 4.000000e+00 : f32
      %56 = arith.mulf %55, %cst_28 : f32
      %57 = tpu.iota {dimensions = array<i32: 1>} : vector<1x128xi32>
      %c0_i32_29 = arith.constant 0 : i32
      %58 = vector.broadcast %c0_i32_29 : i32 to vector<1x128xi32>
      %59 = arith.cmpi eq, %57, %58 : vector<1x128xi32>
      %c1_i32 = arith.constant 1 : i32
      %60 = vector.broadcast %c1_i32 : i32 to vector<1x128xi32>
      %61 = arith.cmpi eq, %57, %60 : vector<1x128xi32>
      %cst_30 = arith.constant 0.000000e+00 : f32
      %62 = vector.broadcast %56 : f32 to vector<1x128xf32>
      %63 = vector.broadcast %cst_30 : f32 to vector<1x128xf32>
      %64 = arith.select %61, %62, %63 : vector<1x128xi1>, vector<1x128xf32>
      %65 = vector.broadcast %47 : f32 to vector<1x128xf32>
      %66 = arith.select %59, %65, %64 : vector<1x128xi1>, vector<1x128xf32>
      %c0_31 = arith.constant 0 : index
      %c0_32 = arith.constant 0 : index
      %c0_33 = arith.constant 0 : index
      %67 = vector.load %arg6[%c0_31, %c0_32, %c0_33] : memref<1x1x128xf32, #tpu.memory_space<vmem>>, vector<1x1x128xf32>
      %68 = vector.shape_cast %67 : vector<1x1x128xf32> to vector<1x128xf32>
      %69 = vector.shape_cast %66 : vector<1x128xf32> to vector<1x1x128xf32>
      tpu.vector_store %arg6[%c0_31, %c0_32, %c0_33], %69 {strides = array<i32>} : memref<1x1x128xf32, #tpu.memory_space<vmem>>, vector<1x1x128xf32>,
    } else {
    }
    return
  }
  func.func @transform_0(%arg0: i32, %arg1: i32) -> (i32, i32, i32) {
    %c0_i32 = arith.constant 0 : i32
    %c0_i32_0 = arith.constant 0 : i32
    %c0_i32_1 = arith.constant 0 : i32
    return %arg0, %c0_i32, %c0_i32_0 : i32, i32, i32
  }
  func.func @transform_1(%arg0: i32, %arg1: i32) -> (i32, i32, i32) {
    %c0_i32 = arith.constant 0 : i32
    %c0_i32_0 = arith.constant 0 : i32
    return %arg0, %c0_i32, %arg1 : i32, i32, i32
  }
  func.func @transform_2(%arg0: i32, %arg1: i32) -> (i32, i32, i32) {
    %c0_i32 = arith.constant 0 : i32
    %c0_i32_0 = arith.constant 0 : i32
    %c0_i32_1 = arith.constant 0 : i32
    return %arg0, %c0_i32, %c0_i32_0 : i32, i32, i32
  }
  func.func @transform_3(%arg0: i32, %arg1: i32) -> (i32, i32, i32) {
    %c0_i32 = arith.constant 0 : i32
    %c0_i32_0 = arith.constant 0 : i32
    %c0_i32_1 = arith.constant 0 : i32
    return %arg0, %c0_i32, %c0_i32_0 : i32, i32, i32
  }
  func.func @transform_4(%arg0: i32, %arg1: i32) -> (i32, i32, i32) {
    %c0_i32 = arith.constant 0 : i32
    %c0_i32_0 = arith.constant 0 : i32
    %c0_i32_1 = arith.constant 0 : i32
    return %arg0, %c0_i32, %c0_i32_0 : i32, i32, i32
  }
}

</mosaic_0001>

<bundles_post_ra>
// kernel: tpu_custom_call.1
= control target key start
LH: loop header
LB: loop body
LE: loop exit
PB: predicated region body
PF: predicated region fallthrough
CT: control target
= control target key end

     0   :  { %9 = vsyncpa [#allocation4], 0  ;;  %s3215_s0 = inlined_call_operand.hbm [shape: s32[2,1,8], index: 0, kind: input, shape index: {}]   ;;  %s3216_s1 = inlined_call_operand.hbm [shape: f32[2,4,256], index: 1, kind: input, shape index: {}]   ;;  %s3217_s2 = inlined_call_operand.vmem [shape: f32[2,1,8], index: 2, kind: input, shape index: {}]   ;;  %s3218_s3 = inlined_call_operand.vmem [shape: f32[2,4,8], index: 3, kind: input, shape index: {}]   ;;  %s3219_s4 = inlined_call_operand.hbm [shape: f32[2,1,128], index: 4, kind: output, shape index: {}]  }
   0x1   :  { %11 = vsyncpa [#allocation4 + $0x1], 0 }
   0x2   :  { %12 = vsyncpa [#allocation7], 0 }
   0x3   :  { %14 = vsyncpa [#allocation7 + $0x1], 0 }
   0x4   :  { %15 = vsyncpa [#allocation5], 0 }
   0x5   :  { %17 = vsyncpa [#allocation5 + $0x1], 0  ;;  %s2325_s15 = smov 0   ;;  %s2327_s16 = smov 0  }
   0x6   :  { %s2329_s17 = smov 0   ;;  %s2331_s18 = smov 0  }
   0x7   :  { %s2333_s19 = smov 0   ;;  %s2335_s20 = smov 0  }
   0x8 LB: > { %s1523_s21 = sadd.s32 4294967295, %s2292_s20   ;;  %s1524_s22 = sadd.s32 4294967294, %s2292_s20   ;;  %s2292_s20 = sphi %s2335_s20, %s23_s20   ;;  %s2288_s19 = sphi %s2333_s19, %s3383_s19   ;;  %s2284_s18 = sphi %s2331_s18, %s3382_s18   ;;  %s2280_s17 = sphi %s2329_s17, %s3381_s17   ;;  %s2276_s16 = sphi %s2327_s16, %s3380_s16   ;;  %s2272_s15 = sphi %s2325_s15, %s3379_s15  }
   0x9   : > { %s35_s23 = sadd.s32 1, %s2288_s19  ;;  %s42_s24 = sadd.s32 1, %s2280_s17 }
   0xa   : > { %p37_p0 = scmp.ge.s32.totalorder %s35_s23, 2  ;;  %p49_p1 = scmp.ne.s32.totalorder %s2280_s17, %s2276_s16 }
   0xb   : > { %p50_p2 = scmp.eq.s32.totalorder %s2292_s20, 0  ;;  %p55_p3 = scmp.ne.s32.totalorder %s2276_s16, %s2272_s15 }
   0xc   : > { %s3385_s23 = smov (%p37_p0, %s35_s23), 0  ;;  %p56_p5 = scmp.eq.s32.totalorder %s1523_s21, 0 }
   0xd   : > { %p2366_p4 = por %p50_p2, %p49_p1  ;;  %s39_s26 = ssub.s32 %s2288_s19, %s3385_s23 }
   0xe   : > { %p159_p6 = scmp.eq.s32.totalorder %s1523_s21, 1  ;;  %p40_p7 = scmp.eq.s32.totalorder %s39_s26, 0 }
   0xf   : > { %p2372_p8 = por %p56_p5, %p55_p3  ;;  %p165_p10 = scmp.eq.s32.totalorder %s1524_s22, 1 }
  0x10   : > { %p2376_p9 = por %p159_p6, %p49_p1  ;;  %p2092_p13 = scmp.lt.s32.totalorder %s2292_s20, 2 }
  0x11   : > { %s3280_s27 = scalar_select %p2372_p8, 1, 0 }
  0x12   : > { %s3281_s28 = scalar_select %p2376_p9, 1, 0 }
  0x13   : > { %s2381_s29 = scalar_select %p40_p7, %s2280_s17, %s42_s24  }
  0x14   : > { %p2383_p11 = por %p165_p10, %p55_p3  ;;  %s2390_s5 = sand.u32 1, %s2280_s17  }
  0x15   : > { %s1527_s6 = sshll.u32 %s2288_s19, 4  ;;  %s188_s7 = scalar_lea.vmem [#allocation3], %s2390_s5 }
  0x16   : > { %s3282_s30 = scalar_select %p2383_p11, 1, 0 }
  0x17   : > { %s195_s8 = sshll.u32 %s188_s7, 4  ;;  %s2397_s11 = scalar_lea.hbm %s3215_s0, %s1527_s6  ;;  %s2399_s8 = int_to_ptr.vmem [resolvable:$true] %s195_s8 }
  0x18   : > { %p2403_p0 = pnand %p2092_p13, %p2366_p4  ;;  %s1528_s13 = sshll.u32 %s2390_s5, 3 }
  0x19   : > { %s186_s14 = scalar_lea.sflag [#allocation4], %s2390_s5  ;;  %s2146_s21 = scalar_lea.hbm %s2397_s11, 16 }
  0x1a   : > { %p2147_p3 = scmp.ne.s32.totalorder %s2397_s11, %s2146_s21  ;;  %p2148_p5 = pneg %p2403_p0 }
  0x1b   : > { %s2151_s25 = scalar_lea.hbm %s3215_s0, 32  ;;  %p2152_p4 = scmp.lt.u32.totalorder %s2397_s11, %s3215_s0 }
  0x1c   : > { %p2149_p6 = pnand %p2148_p5, %p2147_p3  ;;  %p2153_p10 = scmp.lt.u32.totalorder %s2151_s25, %s2146_s21 }
  0x1d   : > { %p2155_p12 = scmp.lt.u32.totalorder %s2146_s21, %s2397_s11 }
  0x1e   : > { %p2150_p7 = pneg %p2149_p6  ;;  %p2154_p13 = por %p2153_p10, %p2152_p4 }
  0x20   : > { %p2156_p1 = por %p2155_p12, %p2154_p13 }
  0x22   : > { %p2157_p2 = pnand %p2156_p1, %p2150_p7 }
  0x24   : > { %2160 = shalt.err (!%p2157_p2)
}
  0x25   : > { %s2161_s7 = scalar_lea.vmem %s2399_s8, 16  ;;  %s2294_s9 = smov [#allocation3]  }
  0x26   : > { %p2162_p3 = scmp.ne.s32.totalorder %s2399_s8, %s2161_s7  ;;  %s2166_s10 = sshll.u32 %s2294_s9, 4  ;;  %s2167_s10 = int_to_ptr.vmem [resolvable:$false] %s2166_s10 }
  0x27   : > { %s2168_s22 = scalar_lea.vmem %s2167_s10, 32  ;;  %p2169_p9 = scmp.lt.s32.totalorder %s2399_s8, %s2167_s10 }
  0x28   : > { %p2164_p6 = pnand %p2162_p3, %p2148_p5  ;;  %p2170_p4 = scmp.lt.s32.totalorder %s2168_s22, %s2161_s7 }
  0x2a   : > { %p2165_p11 = pneg %p2164_p6  ;;  %p2171_p10 = por %p2170_p4, %p2169_p9 }
  0x2c   : > { %p2172_p12 = pnand %p2171_p10, %p2165_p11 }
  0x2e   : > { %2175 = shalt.err (!%p2172_p12)
}
  0x2f   : > { %2084 = dma.hbm_to_vmem [thread:$0]  (!%p2403_p0), %s2397_s11, 16, %s2399_s8, %s186_s14  }
  0x30   : > { %p3284_p1 = scmp.lt.s32.totalorder %s2292_s20, 3  ;;  %p3285_p2 = scmp.ge.s32.totalorder %s2292_s20, 1 }
  0x31   : > { %s1668_s24 = sshll.u32 %s2288_s19, 7  ;;  %s206_s25 = scalar_lea.vmem [#allocation6], %s1528_s13 }
  0x32   : > { %p2440_p7 = pnand %p3285_p2, %p3284_p1  ;;  %s216_s26 = sshll.u32 %s206_s25, 4  ;;  %s217_s26 = int_to_ptr.vmem [resolvable:$true] %s216_s26 }
  0x33   : > { %s2450_s9 = scalar_lea.hbm %s3216_s1, %s1668_s24  ;;  %s203_s8 = scalar_lea.sflag [#allocation7], %s2390_s5 }
  0x34   : > { %s3286_s21 = scalar_select %p2440_p7, 1, 0 }
  0x35   : > { %s2176_s11 = scalar_lea.hbm %s2450_s9, 128  ;;  %s2181_s10 = scalar_lea.hbm %s3216_s1, 256 }
  0x36   : > { %p2177_p9 = scmp.ne.s32.totalorder %s2450_s9, %s2176_s11  ;;  %p2182_p3 = scmp.lt.u32.totalorder %s2450_s9, %s3216_s1 }
  0x37   : > { %p2183_p6 = scmp.lt.u32.totalorder %s2181_s10, %s2176_s11  ;;  %p2185_p10 = scmp.lt.u32.totalorder %s2176_s11, %s2450_s9 }
  0x38   : > { %p2179_p11 = pnand %p2177_p9, %p2148_p5 }
  0x39   : > { %p2184_p4 = por %p2183_p6, %p2182_p3 }
  0x3a   : > { %p2180_p13 = pneg %p2179_p11 }
  0x3b   : > { %p2186_p12 = por %p2185_p10, %p2184_p4 }
  0x3d   : > { %p2187_p1 = pnand %p2186_p12, %p2180_p13 }
  0x3f   : > { %2190 = shalt.err (!%p2187_p1)
}
  0x40   : > { %s2191_s5 = scalar_lea.vmem %s217_s26, 128  ;;  %s2295_s24 = smov [#allocation6]  }
  0x41   : > { %p2192_p2 = scmp.ne.s32.totalorder %s217_s26, %s2191_s5  ;;  %s2196_s6 = sshll.u32 %s2295_s24, 4  ;;  %s2197_s6 = int_to_ptr.vmem [resolvable:$false] %s2196_s6 }
  0x42   : > { %s2198_s7 = scalar_lea.vmem %s2197_s6, 256  ;;  %p2199_p8 = scmp.lt.s32.totalorder %s217_s26, %s2197_s6 }
  0x43   : > { %p2194_p9 = pnand %p2192_p2, %p2148_p5  ;;  %p2200_p7 = scmp.lt.s32.totalorder %s2198_s7, %s2191_s5 }
  0x45   : > { %p2195_p11 = pneg %p2194_p9  ;;  %p2201_p3 = por %p2200_p7, %p2199_p8 }
  0x47   : > { %p2202_p6 = pnand %p2201_p3, %p2195_p11 }
  0x49   : > { %2205 = shalt.err (!%p2202_p6)
}
  0x4a   : > { %2087 = dma.hbm_to_vmem [thread:$0]  (!%p2403_p0), %s2450_s9, 128, %s217_s26, %s203_s8  }
  0x4b   : > { %p3287_p13 = scmp.ne.s32.totalorder %s3286_s21, 0 }
  0x4d   : > { %238 = sbr.rel (%p3287_p13) target bundleno = 696 (0x2b8), region = 36 }
  0x54   : > { %s2475_s11 = sand.u32 1, %s2276_s16   ;;  %p3288_p5 = scmp.ne.s32.totalorder %s3280_s27, 0 }
  0x55   : > { %s241_s14 = scalar_lea.sflag [#allocation4], %s2475_s11  ;;  %s243_s13 = scalar_lea.vmem [#allocation3], %s2475_s11 }
  0x56   : > { %2259 = dma.done.wait (%p3288_p5), %s241_s14, 16  }
  0x57   : > { %2261 = vsyncadd (%p3288_p5), %s241_s14, 4294967280  ;;  %s1532_s12 = sshll.u32 %s2475_s11, 3  ;;  %s249_s26 = scalar_lea.sflag [#allocation7], %s2475_s11 }
  0x58   : > { %s2485_s21 = scalar_lea.vmem [#allocation6], %s1532_s12 }
  0x59   : > { %2263 = dma.done.wait (%p3288_p5), %s249_s26, 128  }
  0x5a   : > { %2265 = vsyncadd (%p3288_p5), %s249_s26, 4294967168  ;;  %v3222_v0 = vlaneseq  ;;  %v2505_v13 = vld [vmem:[%s243_s13] ss:$0 sm:$0xff]  ;;  %v3247_v18 = vmov 0.0   ;;  %v3249_v24 = vmov 1.0|1.0  }
  0x5b   : > { %p288_p8 = scmp.lt.s32.totalorder %s2284_s18, 1  ;;  %s1665_s14 = sshll.u32 %s2284_s18, 4 }
  0x5c   : > { %v2492_v1 = vshrl.u32 %v3222_v0, 7  ;;  %s286_s12 = scalar_lea.vmem [#allocation8], %s2475_s11  ;;  %s3166_s9 = scalar_lea.hbm %s3219_s4, %s1665_s14 }
  0x5d   : > { %s289_s27 = scalar_select %p288_p8, %s2284_s18, 1 }
  0x5e   : > { %3289 = vst [vmem:[#allocation12_spill] sm:$0xff] %v2492_v1  ;;  %v320_v2 = vadd.s32 128, %v2492_v1  ;;  %v321_v3 = vadd.s32 136, %v2492_v1  ;;  %v305_v4 = vadd.s32 8, %v2492_v1  ;;  %v322_v5 = vadd.s32 144, %v2492_v1  ;;  %s1405_s26 = sshll.u32 %s286_s12, 4  ;;  %s3168_s26 = int_to_ptr.vmem [resolvable:$true] %s1405_s26 }
  0x5f   : > { %v323_v6 = vadd.s32 152, %v2492_v1  ;;  %v306_v7 = vadd.s32 16, %v2492_v1  ;;  %v307_v8 = vadd.s32 24, %v2492_v1  ;;  %v324_v9 = vadd.s32 160, %v2492_v1  ;;  %s290_s10 = scalar_lea.vmem %s3217_s2, %s289_s27  ;;  %s1533_s22 = sshll.u32 %s289_s27, 2 }
  0x60   : > { %v325_v10 = vadd.s32 168, %v2492_v1  ;;  %v308_v11 = vadd.s32 32, %v2492_v1  ;;  %v309_v12 = vadd.s32 40, %v2492_v1  ;;  %v2508_v14 = vadd.s32 176, %v2492_v1  ;;  %s294_s24 = scalar_lea.vmem %s3218_s3, %s1533_s22  ;;  %s1393_s18 = scalar_lea.sflag [#allocation5], %s2475_s11 }
  0x61   : > { %v2511_v15 = vadd.s32 184, %v2492_v1  ;;  %v2514_v16 = vadd.s32 48, %v2492_v1  ;;  %v2517_v17 = vadd.s32 56, %v2492_v1  ;;  %vm390_vm0 = vcmp.eq.s32.totalorder %v320_v2, %v2505_v13  ;;  %s2206_s8 = scalar_lea.vmem %s3168_s26, 16  ;;  %p3376_p7 = scmp.ne.s32.totalorder %s3281_s28, 0 }
  0x62   : > { %vm391_vm1 = vcmp.eq.s32.totalorder %v321_v3, %v2505_v13  ;;  %vm374_vm2 = vcmp.eq.s32.totalorder %v2492_v1, %v2505_v13  ;;  %vm375_vm3 = vcmp.eq.s32.totalorder %v305_v4, %v2505_v13  ;;  %v1551_v19 = vsel %vm390_vm0, 1.0, %v3247_v18  ;;  %p2207_p0 = scmp.ne.s32.totalorder %s3168_s26, %s2206_s8 }
  0x63   : > { %v1552_v20 = vsel %vm391_vm1, 1.0, %v3247_v18  ;;  %vm2526_vm4 = vmpackc.low %vm391_vm1, %vm390_vm0  ;;  %v1535_v22 = vsel %vm374_vm2, 1.0, %v3247_v18  ;;  %v2532_v23 = vadd.s32 192, %v2492_v1  ;;  %v2537_v25 = vsub.f32 %v1551_v19, %v1551_v19 }
  0x64   : > { %1880 = vmatprep.subr.msk.bf16.mxu0 %vm2526_vm4, %v3249_v24  ;;  %v2539_v26 = vsub.f32 %v1552_v20, %v1552_v20  ;;  %v1536_v27 = vsel %vm375_vm3, 1.0, %v3247_v18  ;;  %vm2542_vm5 = vmpackc.low %vm375_vm3, %vm374_vm2  ;;  %v2546_v29 = vsub.f32 %v1535_v22, %v1535_v22  ;;  %vm392_vm6 = vcmp.eq.s32.totalorder %v322_v5, %v2505_v13  ;;  %p2208_p4 = pnand %p2207_p0, %p3376_p7 }
  0x65   : > { %1882 = vmatpush3.bf16.msk.msra.mxu0 %vm2542_vm5, %v3249_v24  ;;  %vm393_vm7 = vcmp.eq.s32.totalorder %v323_v6, %v2505_v13  ;;  %vm376_vm8 = vcmp.eq.s32.totalorder %v306_v7, %v2505_v13  ;;  %vm377_vm9 = vcmp.eq.s32.totalorder %v307_v8, %v2505_v13  ;;  %v1553_v30 = vsel %vm392_vm6, 1.0, %v3247_v18 }
  0x66   : > { %v1554_v31 = vsel %vm393_vm7, 1.0, %v3247_v18  ;;  %vm2557_vm10 = vmpackc.low %vm393_vm7, %vm392_vm6  ;;  %v1537_v33 = vsel %vm376_vm8, 1.0, %v3247_v18  ;;  %v1538_v34 = vsel %vm377_vm9, 1.0, %v3247_v18  ;;  %v2563_v35 = vsub.f32 %v1536_v27, %v1536_v27  ;;  %p2209_p10 = pneg %p2208_p4 }
  0x67   : > { %1884 = vmatprep.subr.msk.bf16.mxu0 %vm2557_vm10, %v3249_v24  ;;  %v2568_v36 = vsub.f32 %v1553_v30, %v1553_v30  ;;  %v2570_v37 = vsub.f32 %v1554_v31, %v1554_v31  ;;  %vm2572_vm11 = vmpackc.low %vm377_vm9, %vm376_vm8  ;;  %v2576_v39 = vsub.f32 %v1537_v33, %v1537_v33  ;;  %vm394_vm12 = vcmp.eq.s32.totalorder %v324_v9, %v2505_v13 }
  0x68   : > { %vm395_vm13 = vcmp.eq.s32.totalorder %v325_v10, %v2505_v13  ;;  %vm378_vm14 = vcmp.eq.s32.totalorder %v308_v11, %v2505_v13  ;;  %vm379_vm15 = vcmp.eq.s32.totalorder %v309_v12, %v2505_v13  ;;  %v2585_v40 = vsub.f32 %v1538_v34, %v1538_v34 }
  0x69   : > { %1886 = vmatpush3.bf16.msk.msra.mxu0 %vm2572_vm11, %v3249_v24  ;;  %v1555_v41 = vsel %vm394_vm12, 1.0, %v3247_v18  ;;  %v1556_v42 = vsel %vm395_vm13, 1.0, %v3247_v18  ;;  %vm2589_vm0 = vmpackc.low %vm395_vm13, %vm394_vm12  ;;  %v1539_v44 = vsel %vm378_vm14, 1.0, %v3247_v18  ;;  %v1540_v47 = vsel %vm379_vm15, 1.0, %v3247_v18 }
  0x6a   : > { %1888 = vmatprep.subr.msk.bf16.mxu0 %vm2589_vm0, %v3249_v24  ;;  %v2597_v45 = vsub.f32 %v1555_v41, %v1555_v41  ;;  %v2599_v46 = vsub.f32 %v1556_v42, %v1556_v42  ;;  %vm2602_vm1 = vmpackc.low %vm379_vm15, %vm378_vm14  ;;  %v2606_v49 = vsub.f32 %v1539_v44, %v1539_v44  ;;  %v3253_v50 = vand.u32 4294901760, %v2537_v25 }
  0x6b   : > { %v3252_v51 = vand.u32 4294901760, %v2539_v26  ;;  %v3244_v52 = vand.u32 4294901760, %v2546_v29  ;;  %v3242_v53 = vand.u32 4294901760, %v2563_v35  ;;  %vm396_vm2 = vcmp.eq.s32.totalorder %v2508_v14, %v2505_v13 }
  0x6c   : > { %vm397_vm3 = vcmp.eq.s32.totalorder %v2511_v15, %v2505_v13  ;;  %vm380_vm6 = vcmp.eq.s32.totalorder %v2514_v16, %v2505_v13  ;;  %vm381_vm7 = vcmp.eq.s32.totalorder %v2517_v17, %v2505_v13  ;;  %v702_v54 = vsub.f32 %v2537_v25, %v3253_v50 }
  0x6d   : > { %1890 = vmatpush3.bf16.msk.msra.mxu0 %vm2602_vm1, %v3249_v24  ;;  %v709_v55 = vsub.f32 %v2539_v26, %v3252_v51  ;;  %v590_v56 = vsub.f32 %v2546_v29, %v3244_v52  ;;  %v597_v57 = vsub.f32 %v2563_v35, %v3242_v53  ;;  %vm2635_vm8 = vmpackc.low %vm397_vm3, %vm396_vm2  ;;  %v2639_v59 = vsub.f32 %v1540_v47, %v1540_v47 }
  0x6e   : > { %v1557_v60 = vsel %vm396_vm2, 1.0, %v3247_v18  ;;  %v1558_v61 = vsel %vm397_vm3, 1.0, %v3247_v18  ;;  %1892 = vmatprep.subr.msk.bf16.mxu0 %vm2635_vm8, %v3249_v24  ;;  %v1541_v62 = vsel %vm380_vm6, 1.0, %v3247_v18  ;;  %vm2650_vm9 = vmpackc.low %vm381_vm7, %vm380_vm6  ;;  %v703_v2 = vand.u32 4294901760, %v702_v54 }
  0x6f   : > { %v710_v3 = vand.u32 4294901760, %v709_v55  ;;  %v591_v4 = vand.u32 4294901760, %v590_v56  ;;  %v598_v5 = vand.u32 4294901760, %v597_v57  ;;  %v2654_v6 = vsub.f32 %v1557_v60, %v1557_v60 }
  0x70   : > { %v2656_v7 = vsub.f32 %v1558_v61, %v1558_v61  ;;  %v1542_v8 = vsel %vm381_vm7, 1.0, %v3247_v18  ;;  %v2662_v9 = vsub.f32 %v1541_v62, %v1541_v62  ;;  %v3238_v12 = vand.u32 4294901760, %v2568_v36 }
  0x71   : > { %v1911_v10 = vpack.c.bf16 %v710_v3, %v703_v2  ;;  %v1913_v11 = vpack.c.bf16 %v598_v5, %v591_v4  ;;  %1894 = vmatpush3.bf16.msk.msra.mxu0 %vm2650_vm9, %v3249_v24  ;;  %v3236_v14 = vand.u32 4294901760, %v2570_v37  ;;  %v3235_v15 = vand.u32 4294901760, %v2576_v39 }
  0x72   : > { %v3233_v16 = vand.u32 4294901760, %v2585_v40  ;;  %v329_v19 = vadd.s32 200, %v2492_v1  ;;  %vm398_vm12 = vcmp.eq.s32.totalorder %v2532_v23, %v2505_v13  ;;  %v716_v17 = vsub.f32 %v2568_v36, %v3238_v12 }
  0x73   : > { %1912 = vmatprep.subr.bf16.mxu1 %v1911_v10  ;;  %v723_v20 = vsub.f32 %v2570_v37, %v3236_v14  ;;  %v1559_v22 = vsel %vm398_vm12, 1.0, %v3247_v18  ;;  %v312_v27 = vadd.s32 64, %v2492_v1  ;;  %v2682_v30 = vsub.f32 %v1542_v8, %v1542_v8 }
  0x74   : > { %1914 = vmatpush3.bf16.msra.mxu1 %v1913_v11  ;;  %v604_v23 = vsub.f32 %v2576_v39, %v3235_v15  ;;  %v611_v31 = vsub.f32 %v2585_v40, %v3233_v16  ;;  %vm399_vm13 = vcmp.eq.s32.totalorder %v329_v19, %v2505_v13  ;;  %v717_v33 = vand.u32 4294901760, %v716_v17 }
  0x75   : > { %v724_v34 = vand.u32 4294901760, %v723_v20  ;;  %v1560_v41 = vsel %vm399_vm13, 1.0, %v3247_v18  ;;  %vm2692_vm14 = vmpackc.low %vm399_vm13, %vm398_vm12  ;;  %v313_v44 = vadd.s32 72, %v2492_v1  ;;  %v2700_v55 = vsub.f32 %v1559_v22, %v1559_v22 }
  0x76   : > { %v605_v47 = vand.u32 4294901760, %v604_v23  ;;  %v612_v54 = vand.u32 4294901760, %v611_v31  ;;  %1896 = vmatprep.subr.msk.bf16.mxu0 %vm2692_vm14, %v3249_v24  ;;  %vm382_vm15 = vcmp.eq.s32.totalorder %v312_v27, %v2505_v13  ;;  %v3229_v60 = vand.u32 4294901760, %v2597_v45 }
  0x77   : > { %v1915_v56 = vpack.c.bf16 %v724_v34, %v717_v33  ;;  %vm383_vm2 = vcmp.eq.s32.totalorder %v313_v44, %v2505_v13  ;;  %v1543_v57 = vsel %vm382_vm15, 1.0, %v3247_v18  ;;  %v2706_v62 = vsub.f32 %v1560_v41, %v1560_v41 }
  0x78   : > { %v1917_v61 = vpack.c.bf16 %v612_v54, %v605_v47  ;;  %v1544_v2 = vsel %vm383_vm2, 1.0, %v3247_v18  ;;  %vm2709_vm3 = vmpackc.low %vm383_vm2, %vm382_vm15  ;;  %v3227_v4 = vand.u32 4294901760, %v2599_v46  ;;  %v2717_v5 = vsub.f32 %v1543_v57, %v1543_v57 }
  0x79   : > { %1916 = vmatprep.subr.bf16.mxu1 %v1915_v56  ;;  %1898 = vmatpush3.bf16.msk.msra.mxu0 %vm2709_vm3, %v3249_v24  ;;  %v730_v8 = vsub.f32 %v2597_v45, %v3229_v60  ;;  %v3225_v10 = vand.u32 4294901760, %v2606_v49  ;;  %v3224_v11 = vand.u32 4294901760, %v2639_v59  ;;  %v330_v17 = vadd.s32 208, %v2492_v1 }
  0x7a   : > { %1918 = vmatpush3.bf16.msra.mxu1 %v1917_v61  ;;  %v737_v19 = vsub.f32 %v2599_v46, %v3227_v4  ;;  %v331_v20 = vadd.s32 216, %v2492_v1  ;;  %v314_v22 = vadd.s32 80, %v2492_v1  ;;  %v315_v33 = vadd.s32 88, %v2492_v1 }
  0x7b   : > { %v731_v27 = vand.u32 4294901760, %v730_v8  ;;  %v618_v23 = vsub.f32 %v2606_v49, %v3225_v10  ;;  %v625_v31 = vsub.f32 %v2639_v59, %v3224_v11  ;;  %vm400_vm6 = vcmp.eq.s32.totalorder %v330_v17, %v2505_v13 }
  0x7c   : > { %v738_v34 = vand.u32 4294901760, %v737_v19  ;;  %vm401_vm7 = vcmp.eq.s32.totalorder %v331_v20, %v2505_v13  ;;  %vm384_vm12 = vcmp.eq.s32.totalorder %v314_v22, %v2505_v13  ;;  %v1561_v47 = vsel %vm400_vm6, 1.0, %v3247_v18 }
  0x7d   : > { %v619_v41 = vand.u32 4294901760, %v618_v23  ;;  %v626_v44 = vand.u32 4294901760, %v625_v31  ;;  %v1562_v54 = vsel %vm401_vm7, 1.0, %v3247_v18  ;;  %vm2742_vm13 = vmpackc.low %vm401_vm7, %vm400_vm6  ;;  %v2746_v57 = vsub.f32 %v1544_v2, %v1544_v2 }
  0x7e   : > { %v1919_v61 = vpack.c.bf16 %v738_v34, %v731_v27  ;;  %1900 = vmatprep.subr.msk.bf16.mxu0 %vm2742_vm13, %v3249_v24  ;;  %v2751_v8 = vsub.f32 %v1561_v47, %v1561_v47  ;;  %vm385_vm15 = vcmp.eq.s32.totalorder %v315_v33, %v2505_v13  ;;  %v2754_v17 = vsub.f32 %v1562_v54, %v1562_v54 }
  0x7f   : > { %v1921_v19 = vpack.c.bf16 %v626_v44, %v619_v41  ;;  %v1545_v20 = vsel %vm384_vm12, 1.0, %v3247_v18  ;;  %vm2757_vm2 = vmpackc.low %vm385_vm15, %vm384_vm12  ;;  %v3312_v22 = vmov 0  ;;  %v3223_v2 = vand.u32 4294901760, %v2654_v6 }
  0x80   : > { %v3313_v22 = vsel %vm2757_vm2, 4294967295, %v3312_v22  ;;  %1920 = vmatprep.subr.bf16.mxu1 %v1919_v61  ;;  %v1546_v27 = vsel %vm385_vm15, 1.0, %v3247_v18  ;;  %1902 = vmatpush3.bf16.msk.msra.mxu0 %vm2757_vm2, %v3249_v24  ;;  %v2766_v23 = vsub.f32 %v1545_v20, %v1545_v20  ;;  %v3226_v31 = vand.u32 4294901760, %v2656_v7 }
  0x81   : > { %v3228_v33 = vand.u32 4294901760, %v2662_v9  ;;  %1922 = vmatpush3.bf16.msra.mxu1 %v1921_v19  ;;  %v744_v34 = vsub.f32 %v2654_v6, %v3223_v2  ;;  %v3232_v41 = vand.u32 4294901760, %v2682_v30  ;;  %v332_v44 = vadd.s32 224, %v2492_v1 }
  0x82   : > { %v333_v47 = vadd.s32 232, %v2492_v1  ;;  %v751_v54 = vsub.f32 %v2656_v7, %v3226_v31  ;;  %v316_v19 = vadd.s32 96, %v2492_v1  ;;  %v317_v20 = vadd.s32 104, %v2492_v1 }
  0x83   : > { %v632_v61 = vsub.f32 %v2662_v9, %v3228_v33  ;;  %v745_v0 = vand.u32 4294901760, %v744_v34  ;;  %v639_v2 = vsub.f32 %v2682_v30, %v3232_v41  ;;  %vm402_vm6 = vcmp.eq.s32.totalorder %v332_v44, %v2505_v13 }
  0x84   : > { %vm403_vm7 = vcmp.eq.s32.totalorder %v333_v47, %v2505_v13  ;;  %v752_v11 = vand.u32 4294901760, %v751_v54  ;;  %v1563_v31 = vsel %vm402_vm6, 1.0, %v3247_v18  ;;  %v3314_v33 = vmov 0 }
  0x85   : > { %v633_v10 = vand.u32 4294901760, %v632_v61  ;;  %v1564_v4 = vsel %vm403_vm7, 1.0, %v3247_v18  ;;  %vm2791_vm12 = vmpackc.low %vm403_vm7, %vm402_vm6  ;;  %v2795_v60 = vsub.f32 %v1546_v27, %v1546_v27  ;;  %v640_v34 = vand.u32 4294901760, %v639_v2 }
  0x86   : > { %v3315_v33 = vsel %vm2791_vm12, 4294967295, %v3314_v33  ;;  %1904 = vmatprep.subr.msk.bf16.mxu0 %vm2791_vm12, %v3249_v24  ;;  %v2800_v44 = vsub.f32 %v1563_v31, %v1563_v31  ;;  %vm386_vm15 = vcmp.eq.s32.totalorder %v316_v19, %v2505_v13  ;;  %v1923_v47 = vpack.c.bf16 %v752_v11, %v745_v0 }
  0x87   : > { %3316 = vst [vmem:[#allocation13_spill] sm:$0xff] %v3315_v33  ;;  %vm387_vm2 = vcmp.eq.s32.totalorder %v317_v20, %v2505_v13  ;;  %v1547_v54 = vsel %vm386_vm15, 1.0, %v3247_v18  ;;  %v3234_v61 = vand.u32 4294901760, %v2700_v55  ;;  %v1925_v41 = vpack.c.bf16 %v640_v34, %v633_v10 }
  0x88   : > { %v2806_v16 = vsub.f32 %v1564_v4, %v1564_v4  ;;  %v1548_v2 = vsel %vm387_vm2, 1.0, %v3247_v18  ;;  %vm2809_vm6 = vmpackc.low %vm387_vm2, %vm386_vm15  ;;  %v3317_v27 = vmov 0  ;;  %v3237_v31 = vand.u32 4294901760, %v2706_v62  ;;  %1924 = vmatprep.subr.bf16.mxu1 %v1923_v47 }
  0x89   : > { %v3318_v27 = vsel %vm2809_vm6, 4294967295, %v3317_v27  ;;  %1906 = vmatpush3.bf16.msk.msra.mxu0 %vm2809_vm6, %v3249_v24  ;;  %v2817_v0 = vsub.f32 %v1547_v54, %v1547_v54  ;;  %v758_v4 = vsub.f32 %v2700_v55, %v3234_v61  ;;  %v3239_v10 = vand.u32 4294901760, %v2717_v5  ;;  %1926 = vmatpush3.bf16.msra.mxu1 %v1925_v41 }
  0x8a   : > { %3319 = vst [vmem:[#allocation14_spill] sm:$0xff] %v3318_v27  ;;  %v3243_v11 = vand.u32 4294901760, %v2746_v57  ;;  %v765_v19 = vsub.f32 %v2706_v62, %v3237_v31  ;;  %v334_v20 = vadd.s32 240, %v2492_v1  ;;  %v335_v34 = vadd.s32 248, %v2492_v1 }
  0x8b   : > { %v318_v47 = vadd.s32 112, %v2492_v1  ;;  %v759_v54 = vand.u32 4294901760, %v758_v4  ;;  %v646_v61 = vsub.f32 %v2717_v5, %v3239_v10  ;;  %v319_v41 = vadd.s32 120, %v2492_v1 }
  0x8c   : > { %v653_v15 = vsub.f32 %v2746_v57, %v3243_v11  ;;  %v766_v14 = vand.u32 4294901760, %v765_v19  ;;  %vm404_vm2 = vcmp.eq.s32.totalorder %v334_v20, %v2505_v13  ;;  %vm405_vm7 = vcmp.eq.s32.totalorder %v335_v34, %v2505_v13 }
  0x8d   : > { %v647_v31 = vand.u32 4294901760, %v646_v61  ;;  %v1565_v12 = vsel %vm404_vm2, 1.0, %v3247_v18  ;;  %v1566_v10 = vsel %vm405_vm7, 1.0, %v3247_v18  ;;  %vm2842_vm6 = vmpackc.low %vm405_vm7, %vm404_vm2  ;;  %v3320_v53 = vmov 0 }
  0x8e   : > { %v654_v4 = vand.u32 4294901760, %v653_v15  ;;  %v3321_v53 = vsel %vm2842_vm6, 4294967295, %v3320_v53  ;;  %v2846_v11 = vsub.f32 %v1548_v2, %v1548_v2  ;;  %v1927_v52 = vpack.c.bf16 %v766_v14, %v759_v54  ;;  %1908 = vmatprep.subr.msk.bf16.mxu0 %vm2842_vm6, %v3249_v24  ;;  %v302_v15 = vld [vmem:[%s2485_s21] sm:$0xff] }
  0x8f   : > { %3322 = vst [vmem:[#allocation15_spill] sm:$0xff] %v3321_v53  ;;  %v2851_v19 = vsub.f32 %v1565_v12, %v1565_v12  ;;  %vm389_vm15 = vcmp.eq.s32.totalorder %v319_v41, %v2505_v13  ;;  %vm3323_vm12 = vcmp.eq.s32.totalorder %v318_v47, %v2505_v13  ;;  %v3325_v14 = vmov 0 }
  0x90   : > { %v1929_v61 = vpack.c.bf16 %v654_v4, %v647_v31  ;;  %v1549_v20 = vsel %vm3323_vm12, 1.0, %v3247_v18  ;;  %v1550_v34 = vsel %vm389_vm15, 1.0, %v3247_v18  ;;  %vm3324_vm2 = vmmov %vm3323_vm12  ;;  %v3251_v2 = vand.u32 4294901760, %v2751_v8  ;;  %1928 = vmatprep.subr.bf16.mxu1 %v1927_v52 }
  0x91   : > { %vm2861_vm7 = vmpackc.low %vm389_vm15, %vm3324_vm2  ;;  %v2866_v12 = vsub.f32 %v1566_v10, %v1566_v10  ;;  %v2871_v31 = vsub.f32 %v1549_v20, %v1549_v20  ;;  %v3255_v54 = vand.u32 4294901760, %v2754_v17  ;;  %v3256_v41 = vand.u32 4294901760, %v2766_v23 }
  0x92   : > { %v3326_v14 = vsel %vm2861_vm7, 4294967295, %v3325_v14  ;;  %1910 = vmatpush3.bf16.msk.msra.mxu0 %vm2861_vm7, %v3249_v24  ;;  %1930 = vmatpush3.bf16.msra.mxu1 %v1929_v61  ;;  %v772_v13 = vsub.f32 %v2751_v8, %v3251_v2  ;;  %v3261_v47 = vand.u32 4294901760, %v2795_v60  ;;  %v472_v52 = vcombine.high %v302_v15, %v302_v15 }
  0x93   : > { %3327 = vst [vmem:[#allocation16_spill] sm:$0xff] %v3326_v14  ;;  %v2879_v10 = vand.u32 4294901760, %v302_v15  ;;  %v2881_v4 = vsub.f32 %v1550_v34, %v1550_v34  ;;  %v779_v20 = vsub.f32 %v2754_v17, %v3255_v54  ;;  %v660_v18 = vsub.f32 %v2766_v23, %v3256_v41 }
  0x94   : > { %v1943_v61 = vpack.c.bf16 %v2539_v26, %v2537_v25  ;;  %v773_v24 = vand.u32 4294901760, %v772_v13  ;;  %v667_v2 = vsub.f32 %v2795_v60, %v3261_v47  ;;  %v2894_v51 = vand.u32 4294901760, %v472_v52 }
  0x95   : > { %v2897_v34 = vsub.f32 %v302_v15, %v2879_v10  ;;  %v780_v50 = vand.u32 4294901760, %v779_v20  ;;  %v661_v1 = vand.u32 4294901760, %v660_v18  ;;  %v3264_v54 = vand.u32 4294901760, %v2800_v44 }
  0x96   : > { %3328 = vst [vmem:[#allocation17_spill] sm:$0xff] %v2894_v51  ;;  %1944 = vmatprep.subr.bf16.mxu0 %v1943_v61  ;;  %v3265_v41 = vand.u32 4294901760, %v2806_v16  ;;  %v668_v14 = vand.u32 4294901760, %v667_v2  ;;  %v2902_v53 = vsub.f32 %v472_v52, %v2894_v51  ;;  %v3273_v47 = vand.u32 4294901760, %v2817_v0  ;;  %811 = vmatprep.mubr.f32.mxu1 %v2894_v51 }
  0x97   : > { %3329 = vst [vmem:[#allocation18_spill] sm:$0xff] %v2897_v34  ;;  %v3270_v13 = vand.u32 4294901760, %v2897_v34  ;;  %v1931_v27 = vpack.c.bf16 %v780_v50, %v773_v24  ;;  %v786_v18 = vsub.f32 %v2800_v44, %v3264_v54  ;;  %v3274_v2 = vand.u32 4294901760, %v2846_v11 }
  0x98   : > { %v793_v15 = vsub.f32 %v2806_v16, %v3265_v41  ;;  %v1933_v20 = vpack.c.bf16 %v668_v14, %v661_v1  ;;  %v572_v52 = vand.u32 4294901760, %v2902_v53  ;;  %v674_v24 = vsub.f32 %v2817_v0, %v3273_v47 }
  0x99   : > { %v579_v61 = vsub.f32 %v2897_v34, %v3270_v13  ;;  %1932 = vmatprep.subr.bf16.mxu1 %v1931_v27  ;;  %v787_v50 = vand.u32 4294901760, %v786_v18  ;;  %v681_v41 = vsub.f32 %v2846_v11, %v3274_v2  ;;  %v3275_v34 = vand.u32 4294901760, %v2851_v19 }
  0x9a   : > { %v794_v54 = vand.u32 4294901760, %v793_v15  ;;  %1934 = vmatpush3.bf16.msra.mxu1 %v1933_v20  ;;  %v573_v1 = vsub.f32 %v2902_v53, %v572_v52  ;;  %v675_v51 = vand.u32 4294901760, %v674_v24  ;;  %v3277_v47 = vand.u32 4294901760, %v2866_v12 }
  0x9b   : > { %v580_v14 = vand.u32 4294901760, %v579_v61  ;;  %v682_v13 = vand.u32 4294901760, %v681_v41  ;;  %v1945_v18 = vpack.c.bf16 %v2563_v35, %v2546_v29  ;;  %v3276_v15 = vand.u32 4294901760, %v2871_v31 }
  0x9c   : > { %v1935_v33 = vpack.c.bf16 %v794_v54, %v787_v50  ;;  %v574_v27 = vand.u32 4294901760, %v573_v1  ;;  %v3278_v20 = vand.u32 4294901760, %v2881_v4  ;;  %v1947_v61 = vpack.c.bf16 %v2570_v37, %v2568_v36 }
  0x9d   : > { %v1937_v2 = vpack.c.bf16 %v682_v13, %v675_v51  ;;  %v800_v54 = vsub.f32 %v2851_v19, %v3275_v34  ;;  %v807_v41 = vsub.f32 %v2866_v12, %v3277_v47  ;;  %v688_v24 = vsub.f32 %v2871_v31, %v3276_v15 }
  0x9e   : > { %1936 = vmatprep.subr.bf16.mxu1 %v1935_v33  ;;  %575 = vmatprep.mubr.f32.mxu0 %v574_v27  ;;  %v695_v51 = vsub.f32 %v2881_v4, %v3278_v20  ;;  %v1949_v50 = vpack.c.bf16 %v2585_v40, %v2576_v39  ;;  %v1951_v15 = vpack.c.bf16 %v2599_v46, %v2597_v45  ;;  %v3361_v21 = vand.u32 4294901760, %v2751_v8 }
  0x9f   : > { %581 = vmatmul.mubr.f32.vlgmr.msra.gmra.mrb[0].mxu0 %v580_v14  ;;  %1938 = vmatpush3.bf16.msra.mxu1 %v1937_v2  ;;  %v801_v33 = vand.u32 4294901760, %v800_v54  ;;  %v808_v13 = vand.u32 4294901760, %v807_v41  ;;  %v689_v1 = vand.u32 4294901760, %v688_v24  ;;  %v1953_v14 = vpack.c.bf16 %v2639_v59, %v2606_v49 }
  0xa0   : > { %1946 = vmatpush3.bf16.msra.mxu0 %v1945_v18  ;;  %v696_v34 = vand.u32 4294901760, %v695_v51  ;;  %948 = vmatprep.mubr.f32.mxu0 %v2902_v53  ;;  %v3330_v2 = vand.u32 4294901760, %v2537_v25  ;;  %v3331_v18 = vand.u32 4294901760, %v2539_v26  ;;  %v3332_v41 = vand.u32 4294901760, %v2546_v29 }
  0xa1   : > { %1948 = vmatprep.subr.bf16.mxu0 %v1947_v61  ;;  %v1939_v27 = vpack.c.bf16 %v808_v13, %v801_v33  ;;  %v3333_v24 = vand.u32 4294901760, %v2563_v35  ;;  %v3334_v61 = vand.u32 4294901760, %v2568_v36  ;;  %v3335_v33 = vand.u32 4294901760, %v2570_v37 }
  0xa2   : > { %v1941_v47 = vpack.c.bf16 %v696_v34, %v689_v1  ;;  %v2007_v54 = vpack.c.bf16 %v3331_v18, %v3330_v2  ;;  %v3336_v34 = vand.u32 4294901760, %v2576_v39  ;;  %v3337_v1 = vand.u32 4294901760, %v2585_v40 }
  0xa3   : > { %v2009_v51 = vpack.c.bf16 %v3333_v24, %v3332_v41  ;;  %1940 = vmatprep.subr.bf16.mxu1 %v1939_v27  ;;  %v2011_v13 = vpack.c.bf16 %v3335_v33, %v3334_v61  ;;  %v3338_v25 = vand.u32 4294901760, %v2597_v45  ;;  %v3339_v26 = vand.u32 4294901760, %v2599_v46 }
  0xa4   : > { %v2013_v20 = vpack.c.bf16 %v3337_v1, %v3336_v34  ;;  %v3340_v29 = vand.u32 4294901760, %v2606_v49  ;;  %v3341_v35 = vand.u32 4294901760, %v2639_v59  ;;  %1950 = vmatpush3.bf16.msra.mxu0 %v1949_v50  ;;  %1942 = vmatpush3.bf16.msra.mxu1 %v1941_v47  ;;  %v3342_v36 = vand.u32 4294901760, %v2654_v6  ;;  %v3358_v34 = vld [vmem:[#allocation17_spill] sm:$0xff] }
  0xa5   : > { %v2015_v2 = vpack.c.bf16 %v3339_v26, %v3338_v25  ;;  %v3343_v37 = vand.u32 4294901760, %v2656_v7  ;;  %v3344_v40 = vand.u32 4294901760, %v2662_v9  ;;  %v3345_v18 = vand.u32 4294901760, %v2682_v30  ;;  %1952 = vmatprep.subr.bf16.mxu0 %v1951_v15 }
  0xa6   : > { %v2017_v27 = vpack.c.bf16 %v3341_v35, %v3340_v29  ;;  %v3346_v46 = vand.u32 4294901760, %v2700_v55  ;;  %v3347_v41 = vand.u32 4294901760, %v2706_v62  ;;  %v3348_v59 = vmov 1.0|1.0  }
  0xa7   : > { %v2019_v39 = vpack.c.bf16 %v3343_v37, %v3342_v36  ;;  %v2021_v45 = vpack.c.bf16 %v3345_v18, %v3344_v40  ;;  %1976 = vmatprep.subr.msk.bf16.mxu1 %vm2526_vm4, %v3348_v59  ;;  %v1955_v47 = vpack.c.bf16 %v2656_v7, %v2654_v6  ;;  %v3349_v50 = vand.u32 4294901760, %v2717_v5  ;;  %813 = vmatmul.mubr.f32.vlgmr.msra.gmra.mrb[0].mxu1 %v2879_v10 }
  0xa8   : > { %v2023_v49 = vpack.c.bf16 %v3347_v41, %v3346_v46  ;;  %v3350_v24 = vand.u32 4294901760, %v2746_v57  ;;  %1954 = vmatpush3.bf16.msra.mxu0 %v1953_v14  ;;  %1978 = vmatpush3.bf16.msk.msra.mxu1 %vm2542_vm5, %v3348_v59  ;;  %v1957_v15 = vpack.c.bf16 %v2682_v30, %v2662_v9  ;;  %v1959_v6 = vpack.c.bf16 %v2706_v62, %v2700_v55  ;;  %v3355_v14 = vld [vmem:[#allocation14_spill] sm:$0xff] }
  0xa9   : > { %1956 = vmatprep.subr.bf16.mxu0 %v1955_v47  ;;  %1980 = vmatprep.subr.msk.bf16.mxu1 %vm2557_vm10, %v3348_v59  ;;  %v1961_v7 = vpack.c.bf16 %v2746_v57, %v2717_v5  ;;  %v1963_v9 = vpack.c.bf16 %v2754_v17, %v2751_v8  ;;  %v1965_v53 = vpack.c.bf16 %v2795_v60, %v2766_v23  ;;  %v3352_v57 = vld [vmem:[#allocation13_spill] sm:$0xff]  ;;  %v3362_v28 = vand.u32 4294901760, %v2754_v17  ;;  %v1343_v47 = vld [vmem:[%s290_s10] sm:$0x1]  ;;  %s2299_s10 = smov [#allocation8]  }
  0xaa   : > { %v2025_v61 = vpack.c.bf16 %v3350_v24, %v3349_v50  ;;  %1055 = vmatprep.mubr.f32.mxu1 %v572_v52  ;;  %v1967_v30 = vpack.c.bf16 %v2806_v16, %v2800_v44  ;;  %v1969_v55 = vpack.c.bf16 %v2846_v11, %v2817_v0  ;;  %v1971_v62 = vpack.c.bf16 %v2866_v12, %v2851_v19  ;;  %v3354_v52 = vld [vmem:[#allocation18_spill] sm:$0xff]  ;;  %v1342_v50 = vld [vmem:[%s294_s24] sm:$0xf]  ;;  %s2210_s22 = sshll.u32 %s2299_s10, 4  ;;  %s2211_s22 = int_to_ptr.vmem [resolvable:$false] %s2210_s22 }
  0xab   : > { %v1973_v5 = vpack.c.bf16 %v2881_v4, %v2871_v31  ;;  %vm3351_vm12 = vnez %v3313_v22  ;;  %vm3353_vm15 = vnez %v3352_v57  ;;  %vm3356_vm2 = vnez %v3355_v14  ;;  %v3374_v24 = vld [vmem:[#allocation12_spill] sm:$0xff]  ;;  %s2212_s25 = scalar_lea.vmem %s2211_s22, 32  ;;  %p2213_p12 = scmp.lt.s32.totalorder %s3168_s26, %s2211_s22 }
  0xac   : > { %1958 = vmatpush3.bf16.msra.mxu0 %v1957_v15  ;;  %1982 = vmatpush3.bf16.msk.msra.mxu1 %vm2572_vm11, %v3348_v59  ;;  %v3363_v32 = vand.u32 4294901760, %v2766_v23  ;;  %v3364_v38 = vand.u32 4294901760, %v2795_v60  ;;  %v3365_v43 = vand.u32 4294901760, %v2800_v44  ;;  %v3366_v8 = vand.u32 4294901760, %v2806_v16  ;;  %p2214_p1 = scmp.lt.s32.totalorder %s2212_s25, %s2206_s8 }
  0xad   : > { %1960 = vmatprep.subr.bf16.mxu0 %v1959_v6  ;;  %1984 = vmatprep.subr.msk.bf16.mxu1 %vm2589_vm0, %v3348_v59  ;;  %v3367_v48 = vand.u32 4294901760, %v2817_v0  ;;  %v3368_v60 = vand.u32 4294901760, %v2846_v11  ;;  %v3369_v58 = vand.u32 4294901760, %v2851_v19  ;;  %v3370_v16 = vand.u32 4294901760, %v2866_v12 }
  0xae   : > { %v2031_v17 = vpack.c.bf16 %v3366_v8, %v3365_v43  ;;  %v3371_v63 = vand.u32 4294901760, %v2871_v31  ;;  %v3372_v0 = vand.u32 4294901760, %v2881_v4  ;;  %v3373_v42 = vmov 0.0   ;;  %p2215_p2 = por %p2214_p1, %p2213_p12 }
  0xaf   : > { %v2033_v23 = vpack.c.bf16 %v3368_v60, %v3367_v48  ;;  %v2035_v44 = vpack.c.bf16 %v3370_v16, %v3369_v58  ;;  %v2298_v6 = vmov 0   ;;  %v3375_v58 = vlaneseq }
  0xb0   : > { %1962 = vmatpush3.bf16.msra.mxu0 %v1961_v7  ;;  %1986 = vmatpush3.bf16.msk.msra.mxu1 %vm2602_vm1, %v3348_v59  ;;  %v2037_v11 = vpack.c.bf16 %v3372_v0, %v3371_v63  ;;  %p2216_p9 = pnand %p2215_p2, %p2209_p10 }
  0xb1   : > { %1964 = vmatprep.subr.bf16.mxu0 %v1963_v9  ;;  %1988 = vmatprep.subr.msk.bf16.mxu1 %vm2635_vm8, %v3348_v59  ;;  %v1384_v16 = vand.u32 127, %v3375_v58 }
  0xb4   : > { %1966 = vmatpush3.bf16.msra.mxu0 %v1965_v53  ;;  %1990 = vmatpush3.bf16.msk.msra.mxu1 %vm2650_vm9, %v3348_v59 }
  0xb5   : > { %1968 = vmatprep.subr.bf16.mxu0 %v1967_v30  ;;  %1992 = vmatprep.subr.msk.bf16.mxu1 %vm2692_vm14, %v3348_v59 }
  0xb8   : > { %1970 = vmatpush3.bf16.msra.mxu0 %v1969_v55  ;;  %1994 = vmatpush3.bf16.msk.msra.mxu1 %vm2709_vm3, %v3348_v59 }
  0xb9   : > { %1972 = vmatprep.subr.bf16.mxu0 %v1971_v62  ;;  %1996 = vmatprep.subr.msk.bf16.mxu1 %vm2742_vm13, %v3348_v59 }
  0xbc   : > { %1974 = vmatpush3.bf16.msra.mxu0 %v1973_v5  ;;  %1998 = vmatpush3.bf16.msk.msra.mxu1 %vm3351_vm12, %v3348_v59 }
  0xbd   : > { %2008 = vmatprep.subr.bf16.mxu0 %v2007_v54  ;;  %2000 = vmatprep.subr.msk.bf16.mxu1 %vm3353_vm15, %v3348_v59 }
  0xbf   : > { %951 = vmatmul.mubr.f32.vlgmr.msra.gmra.mrb[2].mxu0 %v3354_v52 }
  0xc0   : > { %2010 = vmatpush3.bf16.msra.mxu0 %v2009_v51  ;;  %2002 = vmatpush3.bf16.msk.msra.mxu1 %vm3356_vm2, %v3348_v59  ;;  %v3360_v51 = vand.u32 4294901760, %v3354_v52 }
  0xc1   : > { %2012 = vmatprep.subr.bf16.mxu0 %v2011_v13  ;;  %2004 = vmatprep.subr.msk.bf16.mxu1 %vm2842_vm6, %v3348_v59  ;;  %v2029_v13 = vpack.c.bf16 %v3364_v38, %v3363_v32 }
  0xc2   : > { %1225 = vmatprep.mubr.f32.mxu0 %v3358_v34 }
  0xc4   : > { %2014 = vmatpush3.bf16.msra.mxu0 %v2013_v20  ;;  %2006 = vmatpush3.bf16.msk.msra.mxu1 %vm2861_vm7, %v3348_v59  ;;  %v2027_v20 = vpack.c.bf16 %v3362_v28, %v3361_v21 }
  0xc5   : > { %2016 = vmatprep.subr.bf16.mxu0 %v2015_v2  ;;  %2040 = vmatprep.subr.msk.bf16.mxu1 %vm2526_vm4, %v3348_v59  ;;  %vm299_vm4 = vcmask 60416  }
  0xc6   : > { %300 = vst.msk [vmem:[#allocation2] sm:$0xf] %vm299_vm4, %v3373_v42 }
  0xc7   : > { %1059 = vmatmul.mubr.f32.vlgmr.msra.gmra.mrb[2].mxu1 %v3360_v51 }
  0xc8   : > { %2018 = vmatpush3.bf16.msra.mxu0 %v2017_v27  ;;  %2042 = vmatpush3.bf16.msk.msra.mxu1 %vm2542_vm5, %v3348_v59  ;;  %vm1352_vm5 = vcmp.gt.f32.partialorder %v1343_v47, 0.0 }
  0xc9   : > { %2020 = vmatprep.subr.bf16.mxu0 %v2019_v39  ;;  %2044 = vmatprep.subr.msk.bf16.mxu1 %vm2557_vm10, %v3348_v59  ;;  %v1353_v7 = vsel %vm1352_vm5, 1, %v2298_v6  ;;  %v1664_v14 = vsel %vm1352_vm5, 1.0, %v3373_v42 }
  0xca   : > { %1329 = vmatprep.mubr.f32.mxu1 %v3358_v34 }
  0xcc   : > { %2022 = vmatpush3.bf16.msra.mxu0 %v2021_v45  ;;  %2046 = vmatpush3.bf16.msk.msra.mxu1 %vm2572_vm11, %v3348_v59 }
  0xcd   : > { %2024 = vmatprep.subr.bf16.mxu0 %v2023_v49  ;;  %2048 = vmatprep.subr.msk.bf16.mxu1 %vm2589_vm0, %v3348_v59  ;;  %v470_v41 = vld [vmem:[#allocation2] sm:$0xf]  ;;  %vm1371_vm0 = vcmask 57344  }
  0xce   : > { %v1372_v34 = vsel %vm1371_vm0, %v1664_v14, 0.0 }
  0xd0   : > { %2026 = vmatpush3.bf16.msra.mxu0 %v2025_v61  ;;  %2050 = vmatpush3.bf16.msk.msra.mxu1 %vm2602_vm1, %v3348_v59  ;;  %v1356_v61 = vsub.s32 0, %v3374_v24  ;;  %vm1386_vm1 = vcmp.eq.s32.totalorder %v1384_v16, 1 }
  0xd1   : > { %2028 = vmatprep.subr.bf16.mxu0 %v2027_v20  ;;  %2052 = vmatprep.subr.msk.bf16.mxu1 %vm2635_vm8, %v3348_v59  ;;  %vm1385_vm8 = vcmp.eq.s32.totalorder %v1384_v16, 0 }
  0xd2   : > { %v1357_v30 = vrot.slane %v1353_v7, %v1356_v61 }
  0xd4   : > { %2030 = vmatpush3.bf16.msra.mxu0 %v2029_v13  ;;  %2054 = vmatpush3.bf16.msk.msra.mxu1 %vm2650_vm9, %v3348_v59  ;;  %vm1358_vm10 = vcmp.eq.s32.totalorder %v1357_v30, 1 }
  0xd5   : > { %2032 = vmatprep.subr.bf16.mxu0 %v2031_v17  ;;  %2056 = vmatprep.subr.msk.bf16.mxu1 %vm2692_vm14, %v3348_v59 }
  0xd8   : > { %2034 = vmatpush3.bf16.msra.mxu0 %v2033_v23  ;;  %2058 = vmatpush3.bf16.msk.msra.mxu1 %vm2709_vm3, %v3348_v59 }
  0xd9   : > { %2036 = vmatprep.subr.bf16.mxu0 %v2035_v44  ;;  %2060 = vmatprep.subr.msk.bf16.mxu1 %vm2742_vm13, %v3348_v59 }
  0xdc   : > { %2038 = vmatpush3.bf16.msra.mxu0 %v2037_v11  ;;  %2062 = vmatpush3.bf16.msk.msra.mxu1 %vm3351_vm12, %v3348_v59 }
  0xdd   : > { %2064 = vmatprep.subr.msk.bf16.mxu1 %vm3353_vm15, %v3348_v59 }
  0xdf   : > { %1227 = vmatmul.mubr.f32.vlgmr.msra.gmra.mrb[4].mxu0 %v2879_v10 }
  0xe0   : > { %2066 = vmatpush3.bf16.msk.msra.mxu1 %vm3356_vm2, %v3348_v59 }
  0xe1   : > { %2068 = vmatprep.subr.msk.bf16.mxu1 %vm2842_vm6, %v3348_v59 }
  0xe4   : > { %2070 = vmatpush3.bf16.msk.msra.mxu1 %vm2861_vm7, %v3348_v59 }
  0xe7   : > { %1331 = vmatmul.mubr.f32.vlgmr.msra.gmra.mrb[4].mxu1 %v2879_v10 }
 0x172   : > { %v1701_v3 = vpop.f32.mrb[0].mxu0 }
 0x173   : > { %v1702_v56 = vpop.f32.mrb[1].mxu0 }
 0x174   : > { %v1703_v22 = vadd.f32 %v1702_v56, %v1701_v3 }
 0x17a   : > { %v1736_v19 = vpop.f32.mrb[0].mxu1 }
 0x17b   : > { %v1737_v12 = vpop.f32.mrb[1].mxu1 }
 0x17c   : > { %v1738_v31 = vadd.f32 %v1737_v12, %v1736_v19 }
 0x17e   : > { %v815_v4 = vadd.f32 %v1738_v31, %v1703_v22 }
 0x192   : > { %v1771_v1 = vpop.f32.mrb[2].mxu0 }
 0x193   : > { %v1772_v25 = vpop.f32.mrb[3].mxu0 }
 0x194   : > { %v1773_v26 = vadd.f32 %v1772_v25, %v1771_v1 }
 0x196   : > { %v953_v2 = vadd.f32 %v1773_v26, %v815_v4 }
 0x19a   : > { %v1806_v29 = vpop.f32.mrb[2].mxu1 }
 0x19b   : > { %v1807_v35 = vpop.f32.mrb[3].mxu1 }
 0x19c   : > { %v1808_v10 = vadd.f32 %v1807_v35, %v1806_v29 }
 0x19e   : > { %v1061_v27 = vadd.f32 %v1808_v10, %v953_v2 }
 0x1b2   : > { %v1841_v36 = vpop.f32.mrb[4].mxu0 }
 0x1b3   : > { %v1842_v37 = vpop.f32.mrb[5].mxu0 }
 0x1b4   : > { %v1843_v39 = vadd.f32 %v1842_v37, %v1841_v36 }
 0x1b6   : > { %v1229_v40 = vadd.f32 %v1843_v39, %v1061_v27 }
 0x1ba   : > { %v1876_v18 = vpop.f32.mrb[4].mxu1 }
 0x1bb   : > { %v1877_v45 = vpop.f32.mrb[5].mxu1 }
 0x1bc   : > { %v1878_v46 = vadd.f32 %v1877_v45, %v1876_v18 }
 0x1be   : > { %v1333_v49 = vadd.f32 %v1878_v46, %v1229_v40 }
 0x1c0   : > { %v1336_v59 = vadd.f32 %v1333_v49, %v470_v41 }
 0x1c2   : > { %1338 = vst.msk [vmem:[#allocation2] sm:$0xf] %vm299_vm4, %v1336_v59 }
 0x1c9   : > { %v1344_v15 = vld [vmem:[#allocation2] sm:$0xf] }
 0x1ca   : > { %v1345_v9 = vsub.f32 %v1344_v15, %v1342_v50 }
 0x1cc   : > { %v1346_v53 = vand.u32 2147483647, %v1345_v9 }
 0x1ce   : > { %v1348_v55 = vmul.f32 0.5, %v1346_v53  ;;  %v1663_v5 = vadd.f32 -0.5, %v1346_v53  ;;  %vm1347_vm11 = vcmp.lt.f32.partialorder %v1346_v53, 1.0 }
 0x1d0   : > { %v1349_v62 = vmul.f32 %v1348_v55, %v1346_v53 }
 0x1d2   : > { %v1351_v57 = vsel %vm1347_vm11, %v1349_v62, %v1663_v5 }
 0x1d3   : > { %v1359_v52 = vsel %vm1358_vm10, %v1351_v57, 0.0 }
 0x1d4   : > { %v1360_v33 = vsel %vm299_vm4, %v1359_v52, 0.0 }
 0x1d5   : > { %1361 = vadd.xlane.f32.xlu0 %v1360_v33 }
 0x1d9   : > { %1373 = vadd.xlane.f32.xlu0 %v1372_v34 }
 0x262   : > { %v1362_v54 = vpop.xlane.xlu0 %1361 }
 0x263   : > { %v1363_v51 = vrot.slane %v1362_v54, 4 }
 0x265   : > { %v1364_v21 = vadd.f32 %v1363_v51, %v1362_v54 }
 0x266   : > { %v1374_v28 = vpop.xlane.xlu0 %1373 }
 0x267   : > { %v1365_v20 = vrot.slane %v1364_v21, 2  ;;  %v1375_v32 = vrot.slane %v1374_v28, 4 }
 0x269   : > { %v1376_v38 = vadd.f32 %v1375_v32, %v1374_v28  ;;  %v1366_v13 = vadd.f32 %v1365_v20, %v1364_v21 }
 0x26b   : > { %v1377_v43 = vrot.slane %v1376_v38, 2  ;;  %v1367_v8 = vrot.slane %v1366_v13, 1 }
 0x26d   : > { %v1378_v17 = vadd.f32 %v1377_v43, %v1376_v38  ;;  %v1368_v48 = vadd.f32 %v1367_v8, %v1366_v13 }
 0x26f   : > { %2071 = vpush %v1368_v48  ;;  %v1379_v60 = vrot.slane %v1378_v17, 1 }
 0x271   : > { %v1380_v23 = vadd.f32 %v1379_v60, %v1378_v17 }
 0x273   : > { %2073 = vpush %v1380_v23 }
 0x2a0   : > { %s2072_s6 = spop %2071 }
 0x2a1   : > { %v1389_v63 = vstv %s2072_s6 }
 0x2a4   : > { %s2074_s7 = spop %2073 }
 0x2a5   : > { %s1382_s13 = smul.f32 4.0, %s2074_s7 }
 0x2a7   : > { %v1387_v44 = vstv %s1382_s13 }
 0x2a8   : > { %v1388_v0 = vsel %vm1386_vm1, %v1387_v44, 0.0 }
 0x2a9   : > { %v1390_v11 = vsel %vm1385_vm8, %v1389_v63, %v1388_v0 }
 0x2aa   : > { %1391 = vst [vmem:[%s286_s12] sm:$0x1] %v1390_v11 }
 0x2ab   : > { %2219 = shalt.err (!%p2216_p9)
}
 0x2ac   : > { %s2220_s11 = scalar_lea.hbm %s3166_s9, 16  ;;  %s2224_s6 = scalar_lea.hbm %s3219_s4, 32 }
 0x2ad   : > { %p2221_p11 = scmp.ne.s32.totalorder %s3166_s9, %s2220_s11  ;;  %p2225_p13 = scmp.lt.u32.totalorder %s3166_s9, %s3219_s4 }
 0x2ae   : > { %p2226_p5 = scmp.lt.u32.totalorder %s2224_s6, %s2220_s11  ;;  %p2228_p0 = scmp.lt.u32.totalorder %s2220_s11, %s3166_s9 }
 0x2af   : > { %p2222_p3 = pnand %p2221_p11, %p3376_p7 }
 0x2b0   : > { %p2227_p8 = por %p2226_p5, %p2225_p13 }
 0x2b1   : > { %p2223_p6 = pneg %p2222_p3 }
 0x2b2   : > { %p2229_p4 = por %p2228_p0, %p2227_p8 }
 0x2b4   : > { %p2230_p10 = pnand %p2229_p4, %p2223_p6 }
 0x2b6   : > { %2233 = shalt.err (!%p2230_p10)
}
 0x2b7   : > { %2079 = dma.vmem_to_hbm [thread:$0]  (%p3376_p7), %s3168_s26, 16, %s3166_s9, %s1393_s18  }
 0x2b8 PF: > { %s1417_s13 = sand.u32 1, %s2272_s15   ;;  %p3377_p12 = scmp.ne.s32.totalorder %s3282_s30, 0 }
 0x2b9   : > { %p3378_p1 = scmp.ge.s32.totalorder %s2292_s20, 2  ;;  %s1418_s12 = scalar_lea.sflag [#allocation5], %s1417_s13 }
 0x2bb   : > { %p2089_p2 = pnand %p3378_p1, %p3377_p12 }
 0x2bd   : > { %2267 = dma.done.wait (!%p2089_p2), %s1418_s12, 16  }
 0x2be   : > { %2269 = vsyncadd (!%p2089_p2), %s1418_s12, 4294967280  ;;  %s23_s20 = sadd.s32 1, %s2292_s20   ;;  %s3379_s15 = smov %s2276_s16 }
 0x2bf   : > { %p20_p9 = scmp.ge.s32.totalorder %s23_s20, 4   ;;  %s3380_s16 = smov %s2280_s17 }
 0x2c0   : > { %s3381_s17 = smov %s2381_s29  ;;  %s3382_s18 = smov %s2288_s19 }
 0x2c1   : > { %s3383_s19 = smov %s3385_s23  ;;  %22 = sbr.rel (!%p20_p9) target bundleno = 8 (0x8), region = 108 }
 0x2c8   :  { %1422 = vsyncpa [#allocation4], 1 }
 0x2c9   :  { %1424 = vsyncpa [#allocation4 + $0x1], 1 }
 0x2ca   :  { %1425 = vsyncpa [#allocation7], 1 }
 0x2cb   :  { %1427 = vsyncpa [#allocation7 + $0x1], 1 }
 0x2cc   :  { %1428 = vsyncpa [#allocation5], 1 }
 0x2cd   :  { %1430 = vsyncpa [#allocation5 + $0x1], 1 }

</bundles_post_ra>
